<compile_context>
chip_gen: v7x
topology: tpu7x:2x2x1
jax: 0.10.0
libtpu: 0.0.40
codegen_flags: <defaults>
</compile_context>

<pallas_src>
import math
import numpy as np
import jax
import jax.numpy as jnp
from jax.experimental import pallas as pl
from jax.experimental.pallas import tpu as pltpu

_BIG = 100000.0
_PDIST_EPS = 1e-6          # torch.nn.PairwiseDistance default eps (added to delta)
_INV_SQRT2 = 0.7071067811865476
_DIFF_FLOOR = 1e-30        # guards log() against cancellation-driven diff <= 0
_C_TILE_MAX = 512          # lanes per grid step (multiple of 128)
_R_TILE_MAX = 256          # rows per grid step (multiple of 8)

# Abramowitz & Stegun 7.1.26 erf coefficients (|err| < 1.5e-7)
_A1, _A2, _A3, _A4, _A5 = (0.254829592, -0.284496736, 1.421413741,
                           -1.453152027, 1.061405429)
_P_ERF = 0.3275911


def _round_up(x, m):
    return ((x + m - 1) // m) * m


def _cdiv(a, b):
    return -(-a // b)


def _phi(x, *, use_pl_recip):
    """Standard normal CDF via A&S erf; identical math in kernel and reference.

    Inside the kernel the rational term's divide runs on the EUP
    (pl.reciprocal approx) followed by one Newton step; outside it uses the
    exact f32 divide.  The difference is ~1e-7 relative, below the erf error.
    """
    z = x * _INV_SQRT2
    sign = jnp.where(z < 0, -1.0, 1.0)
    az = jnp.abs(z)
    den = 1.0 + _P_ERF * az
    if use_pl_recip:
        r = pl.reciprocal(den, approx=True)
        r = r * (2.0 - den * r)          # one Newton-Raphson refinement
    else:
        r = 1.0 / den
    t = r
    poly = t * (_A1 + t * (_A2 + t * (_A3 + t * (_A4 + t * _A5))))
    erf_abs = 1.0 - poly * jnp.exp(-az * az)
    return 0.5 * (1.0 + sign * erf_abs)


def pol2vec_kernel(zr_ref, paug_ref, th_ref, out_ref):
    # zr_ref  : (1, D*RT, K)  row poly coefficients + d-indicator (d-major per r-tile)
    # paug_ref: (K, CT)       rows 0..O-1: t^o/o! ; rows O..O+D-1: eps - z_col[d]; all * 1/sigma
    # th_ref  : (2, RT, CT)   plane 0: (theta[y1]-gr-gc)/sigma, plane 1: theta[y0]-variant;
    #                         masked / padded entries hold +/-BIG -> log term is exactly 0
    # out_ref : (1, 1, CT)    per-lane partial log-likelihood sums (accumulated over r tiles)
    DRT = zr_ref.shape[1]
    RT = th_ref.shape[1]
    D = DRT // RT

    # One MXU contraction gives delta[d*RT + r, c] = (z_pos(r,t_c)[d] - zc[d,c] + eps)/sigma
    delta = jnp.dot(zr_ref[0], paug_ref[...],
                    preferred_element_type=jnp.float32,
                    precision=jax.lax.Precision.HIGHEST)        # (D*RT, CT)

    dist2 = None
    for d in range(D):
        dd = delta[d * RT:(d + 1) * RT, :]
        sq = dd * dd
        dist2 = sq if dist2 is None else dist2 + sq
    dist = jnp.sqrt(dist2)                                      # (RT, CT) == dist / sigma

    u1 = th_ref[0] + dist
    u0 = th_ref[1] + dist
    diff = _phi(u1, use_pl_recip=True) - _phi(u0, use_pl_recip=True)
    ll = jnp.log(jnp.maximum(diff, _DIFF_FLOOR))                # masked entries -> log(1)=0

    partial = jnp.sum(ll, axis=0, keepdims=True)                # (1, CT) per-lane sums

    @pl.when(pl.program_id(1) == 0)
    def _():
        out_ref[0] = partial

    @pl.when(pl.program_id(1) != 0)
    def _():
        out_ref[0] = out_ref[0] + partial


def pol2vec_multi_forward(events_mat, col_idx_list, col_times, params):
    z_rows = params["z_rows"]            # (O, R, D)
    z_cols = params["z_cols"]            # (col_size, D)
    gamma_rows = params["gamma_rows"]    # (R,)
    gamma_cols = params["gamma_cols"]    # (col_size,)
    b = params["b"]                      # (class_num - 1,)
    sigma = params["sigma"]              # (1,)

    events = jnp.asarray(events_mat, jnp.int32)
    R, C = events.shape
    O, _, D = z_rows.shape
    col_idx = jnp.asarray(col_idx_list, jnp.int32)
    times = jnp.asarray(col_times, jnp.float32)

    k_raw = O + D
    K = _round_up(k_raw, 8)              # pad contraction dim for clean sublane tiling

    # ---- tiling ----------------------------------------------------------
    c_al = _round_up(C, 128)
    n_ct = max(_cdiv(c_al, _C_TILE_MAX), 2 if c_al >= 256 else 1)   # >=2 tiles for v7x 2-TC
    c_tile = _round_up(_cdiv(c_al, n_ct), 128)
    c_pad = n_ct * c_tile

    r_al = _round_up(R, 8)
    n_rt = _cdiv(r_al, _R_TILE_MAX)
    r_tile = _round_up(_cdiv(r_al, n_rt), 8)
    r_pad = n_rt * r_tile

    inv_sigma = 1.0 / jnp.asarray(sigma, jnp.float32).reshape(())

    # ---- z_rows -> d-major-per-r-tile MXU operand, augmented with indicator
    zr = jnp.transpose(z_rows.astype(jnp.float32), (2, 1, 0))          # (D, R, O)
    zr = jnp.pad(zr, ((0, 0), (0, r_pad - R), (0, 0)))
    ind = jnp.broadcast_to(jnp.eye(D, dtype=jnp.float32)[:, None, :], (D, r_pad, D))
    zr_aug = jnp.concatenate([zr, ind], axis=-1)                       # (D, r_pad, O+D)
    zr_aug = (zr_aug.reshape(D, n_rt, r_tile, k_raw)
                    .transpose(1, 0, 2, 3)
                    .reshape(n_rt, D * r_tile, k_raw))
    zr_aug = jnp.pad(zr_aug, ((0, 0), (0, 0), (0, K - k_raw)))

    # ---- column-side MXU operand: [t^o/o! ; eps - z_col[d]] * (1/sigma) ---
    rows = []
    tp = jnp.ones_like(times)
    for o in range(O):
        rows.append(tp * (1.0 / float(math.factorial(o))))
        if o + 1 < O:
            tp = tp * times
    P = jnp.stack(rows, axis=0)                                        # (O, C)
    zc = z_cols[col_idx].T.astype(jnp.float32)                         # (D, C)
    p_aug = jnp.concatenate([P, _PDIST_EPS - zc], axis=0) * inv_sigma  # (O+D, C)
    p_aug = jnp.pad(p_aug, ((0, K - k_raw), (0, c_pad - C)))

    # ---- theta pre-gather with gammas and 1/sigma folded in ---------------
    theta = jnp.concatenate([jnp.array([-_BIG], jnp.float32),
                             b.astype(jnp.float32),
                             jnp.array([_BIG], jnp.float32)])
    gr = gamma_rows.astype(jnp.float32)[:, None]
    gc = gamma_cols[col_idx].astype(jnp.float32)[None, :]
    mask = events != 0
    th1 = jnp.where(mask, (theta[events] - gr - gc) * inv_sigma, _BIG)
    th0 = jnp.where(mask,
                    (theta[jnp.clip(events - 1, 0, theta.shape[0] - 1)] - gr - gc)
                    * inv_sigma,
                    -_BIG)
    th1 = jnp.pad(th1, ((0, r_pad - R), (0, c_pad - C)), constant_values=_BIG)
    th0 = jnp.pad(th0, ((0, r_pad - R), (0, c_pad - C)), constant_values=-_BIG)
    th_pack = jnp.stack([th1, th0], axis=0)                            # (2, r_pad, c_pad)

    partials = pl.pallas_call(
        pol2vec_kernel,
        out_shape=jax.ShapeDtypeStruct((n_ct, 1, c_tile), jnp.float32),
        grid=(n_ct, n_rt),
        in_specs=[
            pl.BlockSpec((1, D * r_tile, K), lambda i, j: (j, 0, 0)),   # z_rows (r-tiled)
            pl.BlockSpec((K, c_tile), lambda i, j: (0, i)),             # P_aug  (c-tiled)
            pl.BlockSpec((2, r_tile, c_tile), lambda i, j: (0, j, i)),  # theta planes
        ],
        out_specs=pl.BlockSpec((1, 1, c_tile), lambda i, j: (i, 0, 0)),
        compiler_params=pltpu.CompilerParams(
            dimension_semantics=("parallel", "arbitrary"),
            vmem_limit_bytes=32 * 1024 * 1024),
    )(zr_aug, p_aug, th_pack)

    return -jnp.sum(partials)            # padded / masked lanes contribute exactly 0


def reference_forward(events_mat, col_idx_list, col_times, params):
    """Pure-JAX mirror of the torch math (dense + mask), no Pallas / no matmul."""
    z_rows = params["z_rows"].astype(jnp.float32)
    z_cols = params["z_cols"].astype(jnp.float32)
    gamma_rows = params["gamma_rows"].astype(jnp.float32)
    gamma_cols = params["gamma_cols"].astype(jnp.float32)
    b = params["b"].astype(jnp.float32)
    sigma = jnp.asarray(params["sigma"], jnp.float32).reshape(())
    events = jnp.asarray(events_mat, jnp.int32)
    col_idx = jnp.asarray(col_idx_list, jnp.int32)
    t = jnp.asarray(col_times, jnp.float32)
    O, R, D = z_rows.shape

    z_pos = jnp.zeros((R, t.shape[0], D), jnp.float32)
    tp = jnp.ones_like(t)
    for o in range(O):
        z_pos = z_pos + z_rows[o][:, None, :] * (tp / float(math.factorial(o)))[None, :, None]
        tp = tp * t
    delta = z_pos - z_cols[col_idx][None, :, :] + _PDIST_EPS
    dist = jnp.sqrt(jnp.sum(delta * delta, axis=-1))
    f = -dist + gamma_rows[:, None] + gamma_cols[col_idx][None, :]

    theta = jnp.concatenate([jnp.array([-_BIG], jnp.float32), b,
                             jnp.array([_BIG], jnp.float32)])
    u1 = (theta[events] - f) / sigma
    u0 = (theta[jnp.clip(events - 1, 0, theta.shape[0] - 1)] - f) / sigma
    diff = _phi(u1, use_pl_recip=False) - _phi(u0, use_pl_recip=False)
    ll = jnp.log(jnp.maximum(diff, _DIFF_FLOOR))
    ll = jnp.where(events != 0, ll, 0.0)
    return -jnp.sum(ll)


def _build_case(key, R, C, D, order, n_classes, col_size, z_scale=1.0, g_scale=1.0):
    O = order + 1
    k1, k2, k3, k4, k5, k6, k7 = jax.random.split(key, 7)
    params = {
        "gamma_cols": jax.random.uniform(k1, (col_size,), jnp.float32, -g_scale, g_scale),
        "gamma_rows": jax.random.uniform(k2, (R,), jnp.float32, -g_scale, g_scale),
        "z_cols": jax.random.uniform(k3, (col_size, D), jnp.float32, -z_scale, z_scale),
        "z_rows": jax.random.uniform(k4, (O, R, D), jnp.float32, -z_scale, z_scale),
        "sigma": jnp.ones((1,), jnp.float32),
    }
    b = jnp.linspace(-1.0, 1.0, n_classes - 1).astype(jnp.float32)
    b = b.at[(n_classes - 1) // 2].set(0.0)      # matches __init__: middle cutpoint = 0
    params["b"] = b
    events_mat = jax.random.randint(k5, (R, C), 0, n_classes, jnp.int32)
    col_idx = jax.random.randint(k6, (C,), 0, col_size, jnp.int32)
    col_times = jax.random.uniform(k7, (C,), jnp.float32, 0.0, 1.0)
    return params, events_mat, col_idx, col_times


if __name__ == "__main__":
    key1, key2 = jax.random.split(jax.random.PRNGKey(0))

    # case 1: tiny shapes consistent with the module (single tile on each axis)
    case1 = _build_case(key1, R=8, C=16, D=4, order=2, n_classes=3, col_size=32)
    # case 2: forces a (2, 2) grid -> exercises the parallel C-tiles, the
    # r-axis accumulator path and row/lane padding; params are scaled down so
    # the ordered-probit intervals stay well conditioned for the f32 check.
    case2 = _build_case(key2, R=300, C=300, D=4, order=2, n_classes=3,
                        col_size=64, z_scale=0.6, g_scale=0.5)

    for tag, (p, ev, ci, ct) in (("case1", case1), ("case2", case2)):
        loss = jax.block_until_ready(pol2vec_multi_forward(ev, ci, ct, p))
        ref = jax.block_until_ready(reference_forward(ev, ci, ct, p))
        if not np.allclose(np.asarray(loss), np.asarray(ref), rtol=1e-4, atol=1e-4):
            raise AssertionError(f"{tag} mismatch: kernel={loss} ref={ref}")
    print("KERNEL_OK")
</pallas_src>

<mosaic_0001>
module attributes {stable_mosaic.version = 11 : i64} {
  func.func @pol2vec_kernel(%arg0: i32, %arg1: i32, %arg2: memref<1x32x8xf32, #tpu.memory_space<vmem>>, %arg3: memref<8x128xf32, #tpu.memory_space<vmem>>, %arg4: memref<2x8x128xf32, #tpu.memory_space<vmem>>, %arg5: memref<1x1x128xf32, #tpu.memory_space<vmem>>) attributes {dimension_semantics = [#tpu.dimension_semantics<parallel>, #tpu.dimension_semantics<arbitrary>], iteration_bounds = array<i64: 1, 1>, scalar_prefetch = 0 : i64, scratch_operands = 0 : i64, tpu.core_type = #tpu.core_type<tc>, window_params = [{transform_indices = @transform_0, window_bounds = array<i64: 1, 32, 8>}, {transform_indices = @transform_1, window_bounds = array<i64: 8, 128>}, {transform_indices = @transform_2, window_bounds = array<i64: 2, 8, 128>}, {transform_indices = @transform_3, window_bounds = array<i64: 1, 1, 128>}]} {
    %c0 = arith.constant 0 : index
    %c0_0 = arith.constant 0 : index
    %c0_1 = arith.constant 0 : index
    %0 = vector.load %arg2[%c0, %c0_0, %c0_1] : memref<1x32x8xf32, #tpu.memory_space<vmem>>, vector<1x32x8xf32>
    %1 = vector.shape_cast %0 : vector<1x32x8xf32> to vector<32x8xf32>
    %c0_2 = arith.constant 0 : index
    %c0_3 = arith.constant 0 : index
    %2 = vector.load %arg3[%c0_2, %c0_3] : memref<8x128xf32, #tpu.memory_space<vmem>>, vector<8x128xf32>
    %cst = arith.constant dense<0.000000e+00> : vector<32x128xf32>
    %3 = tpu.matmul %1, %2, %cst {dimension_numbers = #tpu.dot_dimension_numbers<[1], [0], [0], [1], [0, 0, 1, 1], [], []>, precision = #tpu.contract_precision<fp32>} : vector<32x8xf32>, vector<8x128xf32>, vector<32x128xf32> -> vector<32x128xf32>
    %4 = vector.extract_strided_slice %3 {offsets = [0, 0], sizes = [8, 128], strides = [1, 1]} : vector<32x128xf32> to vector<8x128xf32>
    %5 = arith.mulf %4, %4 : vector<8x128xf32>
    %6 = vector.extract_strided_slice %3 {offsets = [8, 0], sizes = [8, 128], strides = [1, 1]} : vector<32x128xf32> to vector<8x128xf32>
    %7 = arith.mulf %6, %6 : vector<8x128xf32>
    %8 = arith.addf %5, %7 : vector<8x128xf32>
    %9 = vector.extract_strided_slice %3 {offsets = [16, 0], sizes = [8, 128], strides = [1, 1]} : vector<32x128xf32> to vector<8x128xf32>
    %10 = arith.mulf %9, %9 : vector<8x128xf32>
    %11 = arith.addf %8, %10 : vector<8x128xf32>
    %12 = vector.extract_strided_slice %3 {offsets = [24, 0], sizes = [8, 128], strides = [1, 1]} : vector<32x128xf32> to vector<8x128xf32>
    %13 = arith.mulf %12, %12 : vector<8x128xf32>
    %14 = arith.addf %11, %13 : vector<8x128xf32>
    %15 = math.sqrt %14 : vector<8x128xf32>
    %c0_4 = arith.constant 0 : index
    %c0_5 = arith.constant 0 : index
    %c0_6 = arith.constant 0 : index
    %16 = vector.load %arg4[%c0_4, %c0_5, %c0_6] : memref<2x8x128xf32, #tpu.memory_space<vmem>>, vector<1x8x128xf32>
    %17 = vector.shape_cast %16 : vector<1x8x128xf32> to vector<8x128xf32>
    %18 = arith.addf %17, %15 : vector<8x128xf32>
    %c1 = arith.constant 1 : index
    %c0_7 = arith.constant 0 : index
    %c0_8 = arith.constant 0 : index
    %19 = vector.load %arg4[%c1, %c0_7, %c0_8] : memref<2x8x128xf32, #tpu.memory_space<vmem>>, vector<1x8x128xf32>
    %20 = vector.shape_cast %19 : vector<1x8x128xf32> to vector<8x128xf32>
    %21 = arith.addf %20, %15 : vector<8x128xf32>
    %cst_9 = arith.constant 0.707106769 : f32
    %22 = vector.broadcast %cst_9 : f32 to vector<8x128xf32>
    %23 = arith.mulf %18, %22 : vector<8x128xf32>
    %cst_10 = arith.constant 0.000000e+00 : f32
    %24 = vector.broadcast %cst_10 : f32 to vector<8x128xf32>
    %25 = arith.cmpf olt, %23, %24 : vector<8x128xf32>
    %cst_11 = arith.constant -1.000000e+00 : f32
    %cst_12 = arith.constant 1.000000e+00 : f32
    %26 = vector.broadcast %cst_11 : f32 to vector<8x128xf32>
    %27 = vector.broadcast %cst_12 : f32 to vector<8x128xf32>
    %28 = arith.select %25, %26, %27 : vector<8x128xi1>, vector<8x128xf32>
    %29 = math.absf %23 : vector<8x128xf32>
    %cst_13 = arith.constant 0.327591091 : f32
    %30 = vector.broadcast %cst_13 : f32 to vector<8x128xf32>
    %31 = arith.mulf %30, %29 : vector<8x128xf32>
    %cst_14 = arith.constant 1.000000e+00 : f32
    %32 = vector.broadcast %cst_14 : f32 to vector<8x128xf32>
    %33 = arith.addf %32, %31 : vector<8x128xf32>
    %34 = tpu.reciprocal %33 {approx = true} : vector<8x128xf32> -> vector<8x128xf32>
    %35 = arith.mulf %33, %34 : vector<8x128xf32>
    %cst_15 = arith.constant 2.000000e+00 : f32
    %36 = vector.broadcast %cst_15 : f32 to vector<8x128xf32>
    %37 = arith.subf %36, %35 : vector<8x128xf32>
    %38 = arith.mulf %34, %37 : vector<8x128xf32>
    %cst_16 = arith.constant 1.06140542 : f32
    %39 = vector.broadcast %cst_16 : f32 to vector<8x128xf32>
    %40 = arith.mulf %38, %39 : vector<8x128xf32>
    %cst_17 = arith.constant -1.45315206 : f32
    %41 = vector.broadcast %cst_17 : f32 to vector<8x128xf32>
    %42 = arith.addf %41, %40 : vector<8x128xf32>
    %43 = arith.mulf %38, %42 : vector<8x128xf32>
    %cst_18 = arith.constant 1.42141378 : f32
    %44 = vector.broadcast %cst_18 : f32 to vector<8x128xf32>
    %45 = arith.addf %44, %43 : vector<8x128xf32>
    %46 = arith.mulf %38, %45 : vector<8x128xf32>
    %cst_19 = arith.constant -0.284496725 : f32
    %47 = vector.broadcast %cst_19 : f32 to vector<8x128xf32>
    %48 = arith.addf %47, %46 : vector<8x128xf32>
    %49 = arith.mulf %38, %48 : vector<8x128xf32>
    %cst_20 = arith.constant 0.254829586 : f32
    %50 = vector.broadcast %cst_20 : f32 to vector<8x128xf32>
    %51 = arith.addf %50, %49 : vector<8x128xf32>
    %52 = arith.mulf %38, %51 : vector<8x128xf32>
    %cst_21 = arith.constant 0.000000e+00 : f32
    %53 = vector.broadcast %cst_21 : f32 to vector<8x128xf32>
    %54 = arith.subf %53, %29 : vector<8x128xf32>
    %55 = arith.mulf %54, %29 : vector<8x128xf32>
    %56 = math.exp %55 : vector<8x128xf32>
    %57 = arith.mulf %52, %56 : vector<8x128xf32>
    %cst_22 = arith.constant 1.000000e+00 : f32
    %58 = vector.broadcast %cst_22 : f32 to vector<8x128xf32>
    %59 = arith.subf %58, %57 : vector<8x128xf32>
    %60 = arith.mulf %28, %59 : vector<8x128xf32>
    %cst_23 = arith.constant 1.000000e+00 : f32
    %61 = vector.broadcast %cst_23 : f32 to vector<8x128xf32>
    %62 = arith.addf %61, %60 : vector<8x128xf32>
    %cst_24 = arith.constant 5.000000e-01 : f32
    %63 = vector.broadcast %cst_24 : f32 to vector<8x128xf32>
    %64 = arith.mulf %63, %62 : vector<8x128xf32>
    %cst_25 = arith.constant 0.707106769 : f32
    %65 = vector.broadcast %cst_25 : f32 to vector<8x128xf32>
    %66 = arith.mulf %21, %65 : vector<8x128xf32>
    %cst_26 = arith.constant 0.000000e+00 : f32
    %67 = vector.broadcast %cst_26 : f32 to vector<8x128xf32>
    %68 = arith.cmpf olt, %66, %67 : vector<8x128xf32>
    %cst_27 = arith.constant -1.000000e+00 : f32
    %cst_28 = arith.constant 1.000000e+00 : f32
    %69 = vector.broadcast %cst_27 : f32 to vector<8x128xf32>
    %70 = vector.broadcast %cst_28 : f32 to vector<8x128xf32>
    %71 = arith.select %68, %69, %70 : vector<8x128xi1>, vector<8x128xf32>
    %72 = math.absf %66 : vector<8x128xf32>
    %cst_29 = arith.constant 0.327591091 : f32
    %73 = vector.broadcast %cst_29 : f32 to vector<8x128xf32>
    %74 = arith.mulf %73, %72 : vector<8x128xf32>
    %cst_30 = arith.constant 1.000000e+00 : f32
    %75 = vector.broadcast %cst_30 : f32 to vector<8x128xf32>
    %76 = arith.addf %75, %74 : vector<8x128xf32>
    %77 = tpu.reciprocal %76 {approx = true} : vector<8x128xf32> -> vector<8x128xf32>
    %78 = arith.mulf %76, %77 : vector<8x128xf32>
    %cst_31 = arith.constant 2.000000e+00 : f32
    %79 = vector.broadcast %cst_31 : f32 to vector<8x128xf32>
    %80 = arith.subf %79, %78 : vector<8x128xf32>
    %81 = arith.mulf %77, %80 : vector<8x128xf32>
    %cst_32 = arith.constant 1.06140542 : f32
    %82 = vector.broadcast %cst_32 : f32 to vector<8x128xf32>
    %83 = arith.mulf %81, %82 : vector<8x128xf32>
    %cst_33 = arith.constant -1.45315206 : f32
    %84 = vector.broadcast %cst_33 : f32 to vector<8x128xf32>
    %85 = arith.addf %84, %83 : vector<8x128xf32>
    %86 = arith.mulf %81, %85 : vector<8x128xf32>
    %cst_34 = arith.constant 1.42141378 : f32
    %87 = vector.broadcast %cst_34 : f32 to vector<8x128xf32>
    %88 = arith.addf %87, %86 : vector<8x128xf32>
    %89 = arith.mulf %81, %88 : vector<8x128xf32>
    %cst_35 = arith.constant -0.284496725 : f32
    %90 = vector.broadcast %cst_35 : f32 to vector<8x128xf32>
    %91 = arith.addf %90, %89 : vector<8x128xf32>
    %92 = arith.mulf %81, %91 : vector<8x128xf32>
    %cst_36 = arith.constant 0.254829586 : f32
    %93 = vector.broadcast %cst_36 : f32 to vector<8x128xf32>
    %94 = arith.addf %93, %92 : vector<8x128xf32>
    %95 = arith.mulf %81, %94 : vector<8x128xf32>
    %cst_37 = arith.constant 0.000000e+00 : f32
    %96 = vector.broadcast %cst_37 : f32 to vector<8x128xf32>
    %97 = arith.subf %96, %72 : vector<8x128xf32>
    %98 = arith.mulf %97, %72 : vector<8x128xf32>
    %99 = math.exp %98 : vector<8x128xf32>
    %100 = arith.mulf %95, %99 : vector<8x128xf32>
    %cst_38 = arith.constant 1.000000e+00 : f32
    %101 = vector.broadcast %cst_38 : f32 to vector<8x128xf32>
    %102 = arith.subf %101, %100 : vector<8x128xf32>
    %103 = arith.mulf %71, %102 : vector<8x128xf32>
    %cst_39 = arith.constant 1.000000e+00 : f32
    %104 = vector.broadcast %cst_39 : f32 to vector<8x128xf32>
    %105 = arith.addf %104, %103 : vector<8x128xf32>
    %cst_40 = arith.constant 5.000000e-01 : f32
    %106 = vector.broadcast %cst_40 : f32 to vector<8x128xf32>
    %107 = arith.mulf %106, %105 : vector<8x128xf32>
    %108 = arith.subf %64, %107 : vector<8x128xf32>
    %cst_41 = arith.constant 1.000000e-30 : f32
    %109 = vector.broadcast %cst_41 : f32 to vector<8x128xf32>
    %110 = arith.maximumf %108, %109 : vector<8x128xf32>
    %111 = math.log %110 : vector<8x128xf32>
    %cst_42 = arith.constant dense<0.000000e+00> : vector<128xf32>
    %112 = vector.multi_reduction <add>, %111, %cst_42 [0] : vector<8x128xf32> to vector<128xf32>
    %113 = vector.shape_cast %112 : vector<128xf32> to vector<1x128xf32>
    %c0_i32 = arith.constant 0 : i32
    %114 = arith.cmpi eq, %arg1, %c0_i32 : i32
    %115 = arith.extui %114 : i1 to i32
    %c0_i32_43 = arith.constant 0 : i32
    %116 = arith.cmpi ne, %115, %c0_i32_43 : i32
    scf.if %116 {
      %c0_46 = arith.constant 0 : index
      %c0_47 = arith.constant 0 : index
      %c0_48 = arith.constant 0 : index
      %120 = vector.load %arg5[%c0_46, %c0_47, %c0_48] : memref<1x1x128xf32, #tpu.memory_space<vmem>>, vector<1x1x128xf32>
      %121 = vector.shape_cast %120 : vector<1x1x128xf32> to vector<1x128xf32>
      %122 = vector.shape_cast %113 : vector<1x128xf32> to vector<1x1x128xf32>
      tpu.vector_store %arg5[%c0_46, %c0_47, %c0_48], %122 {strides = array<i32>} : memref<1x1x128xf32, #tpu.memory_space<vmem>>, vector<1x1x128xf32>,
    } else {
    }
    %c0_i32_44 = arith.constant 0 : i32
    %117 = arith.cmpi ne, %arg1, %c0_i32_44 : i32
    %118 = arith.extui %117 : i1 to i32
    %c0_i32_45 = arith.constant 0 : i32
    %119 = arith.cmpi ne, %118, %c0_i32_45 : i32
    scf.if %119 {
      %c0_46 = arith.constant 0 : index
      %c0_47 = arith.constant 0 : index
      %c0_48 = arith.constant 0 : index
      %120 = vector.load %arg5[%c0_46, %c0_47, %c0_48] : memref<1x1x128xf32, #tpu.memory_space<vmem>>, vector<1x1x128xf32>
      %121 = vector.shape_cast %120 : vector<1x1x128xf32> to vector<1x128xf32>
      %122 = arith.addf %121, %113 : vector<1x128xf32>
      %c0_49 = arith.constant 0 : index
      %c0_50 = arith.constant 0 : index
      %c0_51 = arith.constant 0 : index
      %123 = vector.load %arg5[%c0_49, %c0_50, %c0_51] : memref<1x1x128xf32, #tpu.memory_space<vmem>>, vector<1x1x128xf32>
      %124 = vector.shape_cast %123 : vector<1x1x128xf32> to vector<1x128xf32>
      %125 = vector.shape_cast %122 : vector<1x128xf32> to vector<1x1x128xf32>
      tpu.vector_store %arg5[%c0_49, %c0_50, %c0_51], %125 {strides = array<i32>} : memref<1x1x128xf32, #tpu.memory_space<vmem>>, vector<1x1x128xf32>,
    } else {
    }
    return
  }
  func.func @transform_0(%arg0: i32, %arg1: i32) -> (i32, i32, i32) {
    %c0_i32 = arith.constant 0 : i32
    %c0_i32_0 = arith.constant 0 : i32
    %c0_i32_1 = arith.constant 0 : i32
    return %arg1, %c0_i32, %c0_i32_0 : i32, i32, i32
  }
  func.func @transform_1(%arg0: i32, %arg1: i32) -> (i32, i32) {
    %c0_i32 = arith.constant 0 : i32
    %c0_i32_0 = arith.constant 0 : i32
    return %c0_i32, %arg0 : i32, i32
  }
  func.func @transform_2(%arg0: i32, %arg1: i32) -> (i32, i32, i32) {
    %c0_i32 = arith.constant 0 : i32
    %c0_i32_0 = arith.constant 0 : i32
    return %c0_i32, %arg1, %arg0 : i32, i32, i32
  }
  func.func @transform_3(%arg0: i32, %arg1: i32) -> (i32, i32, i32) {
    %c0_i32 = arith.constant 0 : i32
    %c0_i32_0 = arith.constant 0 : i32
    %c0_i32_1 = arith.constant 0 : i32
    return %arg0, %c0_i32, %c0_i32_0 : i32, i32, i32
  }
}

</mosaic_0001>

<bundles_post_ra>
// kernel: tpu_custom_call.1
= control target key start
LH: loop header
LB: loop body
LE: loop exit
PB: predicated region body
PF: predicated region fallthrough
CT: control target
= control target key end

     0   :  { %vm20_vm0 = vcmask 64512   ;;  %s911_s0 = inlined_call_operand.vmem [shape: f32[1,32,8], index: 0, kind: input, shape index: {}]   ;;  %s912_s1 = inlined_call_operand.vmem [shape: f32[8,128], index: 1, kind: input, shape index: {}]   ;;  %s913_s2 = inlined_call_operand.vmem [shape: f32[2,8,128], index: 2, kind: input, shape index: {}]   ;;  %s914_s3 = inlined_call_operand.hbm [shape: f32[1,1,128], index: 3, kind: output, shape index: {}]  }
   0x1   :  { %v19_v0 = vld [vmem:[%s912_s1] sm:$0xff]  ;;  %v16_v2 = vld [vmem:[%s911_s0 + $0x8] sm:$0xff]  ;;  %v17_v6 = vld [vmem:[%s911_s0 + $0x10] sm:$0xff] }
   0x2   :  { %v15_v1 = vld [vmem:[%s911_s0] sm:$0xff]  ;;  %v34_v3 = vand.u32 4294901760, %v19_v0  ;;  %v25_v5 = vsel %vm20_vm0, %v16_v2, 0  ;;  %v18_v7 = vld [vmem:[%s911_s0 + $0x18] sm:$0xff]  ;;  %v28_v10 = vsel %vm20_vm0, %v17_v6, 0 }
   0x3   :  { %v22_v4 = vsel %vm20_vm0, %v15_v1, 0  ;;  %v109_v9 = vand.u32 4294901760, %v25_v5  ;;  %v31_v11 = vsel %vm20_vm0, %v18_v7, 0 }
   0x4   :  { %v99_v8 = vand.u32 4294901760, %v22_v4 }
   0x5   :  { %8 = vsyncpa [#allocation3], 0  ;;  %774 = vmatprep.subr.mxu0 %v34_v3  ;;  %750 = vmatprep.subr.mxu1 %v34_v3  ;;  %v141_v12 = vsub.f32 %v19_v0, %v34_v3  ;;  %v119_v13 = vand.u32 4294901760, %v28_v10  ;;  %v129_v14 = vand.u32 4294901760, %v31_v11  ;;  %v110_v16 = vsub.f32 %v25_v5, %v109_v9  ;;  %v622_v56 = vld [vmem:[%s913_s2] sm:$0xff]  ;;  %v719_v57 = vld [vmem:[%s913_s2 + $0x8] sm:$0xff] }
   0x6   :  { %775 = vmatpush3.msra.mxu0 %v34_v3  ;;  %v100_v15 = vsub.f32 %v22_v4, %v99_v8  ;;  %751 = vmatpush3.msra.mxu1 %v34_v3  ;;  %s857_s2 = smov [#allocation2]  }
   0x7   :  { %v142_v17 = vand.u32 4294901760, %v141_v12  ;;  %v120_v18 = vsub.f32 %v28_v10, %v119_v13  ;;  %v130_v19 = vsub.f32 %v31_v11, %v129_v14  ;;  %v111_v21 = vand.u32 4294901760, %v110_v16  ;;  %s711_s24 = sshll.u32 %s857_s2, 4  ;;  %s712_s24 = int_to_ptr.vmem [resolvable:$true] %s711_s24 }
   0x8   :  { %v101_v20 = vand.u32 4294901760, %v100_v15  ;;  %s832_s25 = scalar_lea.vmem %s712_s24, 16  ;;  %s836_s26 = scalar_lea.vmem %s712_s24, 32 }
   0x9   :  { %v143_v22 = vsub.f32 %v141_v12, %v142_v17  ;;  %v121_v23 = vand.u32 4294901760, %v120_v18  ;;  %782 = vmatprep.subr.mxu0 %v142_v17  ;;  %v131_v24 = vand.u32 4294901760, %v130_v19  ;;  %v112_v26 = vsub.f32 %v110_v16, %v111_v21  ;;  %p833_p0 = scmp.ne.s32.totalorder %s712_s24, %s832_s25  ;;  %p837_p1 = scmp.lt.s32.totalorder %s712_s24, %s712_s24 }
   0xa   :  { %776 = vmatprep.mubr.f32.mxu0 %v101_v20  ;;  %v102_v25 = vsub.f32 %v100_v15, %v101_v20  ;;  %p838_p2 = scmp.lt.s32.totalorder %s836_s26, %s832_s25 }
   0xb   :  { %777 = vmatmul.mubr.f32.vlgmr.msra.gmra.mrb[0].mxu0 %v111_v21  ;;  %v144_v27 = vand.u32 4294901760, %v143_v22  ;;  %v122_v28 = vsub.f32 %v120_v18, %v121_v23  ;;  %v132_v29 = vsub.f32 %v130_v19, %v131_v24  ;;  %v113_v31 = vand.u32 4294901760, %v112_v26 }
   0xc   :  { %v103_v30 = vand.u32 4294901760, %v102_v25  ;;  %779 = vmatprep.mubr.f32.mxu0 %v121_v23  ;;  %783 = vmatpush3.msra.mxu0 %v142_v17  ;;  %p839_p3 = por %p838_p2, %p837_p1 }
   0xd   :  { %758 = vmatprep.subr.mxu1 %v144_v27  ;;  %v123_v32 = vand.u32 4294901760, %v122_v28  ;;  %790 = vmatprep.subr.mxu0 %v34_v3  ;;  %v133_v33 = vand.u32 4294901760, %v132_v29 }
   0xe   :  { %752 = vmatprep.mubr.f32.mxu1 %v103_v30  ;;  %p840_p4 = pnand %p839_p3, %p833_p0 }
   0xf   :  { %753 = vmatmul.mubr.f32.vlgmr.msra.gmra.mrb[0].mxu1 %v113_v31  ;;  %780 = vmatmul.mubr.f32.gmra.mrb[2].mxu0 %v131_v24 }
  0x10   :  { %759 = vmatpush3.msra.mxu1 %v144_v27  ;;  %755 = vmatprep.mubr.f32.mxu1 %v123_v32 }
  0x11   :  { %784 = vmatprep.mubr.f32.mxu0 %v99_v8  ;;  %766 = vmatprep.subr.mxu1 %v141_v12 }
  0x13   :  { %756 = vmatmul.mubr.f32.gmra.mrb[2].mxu1 %v133_v33  ;;  %785 = vmatmul.mubr.f32.vlgmr.msra.gmra.mrb[0].mxu0 %v109_v9 }
  0x14   :  { %760 = vmatprep.mubr.f32.mxu1 %v99_v8  ;;  %787 = vmatprep.mubr.f32.mxu0 %v119_v13 }
  0x15   :  { %791 = vmatpush3.msra.mxu0 %v34_v3 }
  0x17   :  { %761 = vmatmul.mubr.f32.vlgmr.msra.gmra.mrb[0].mxu1 %v109_v9  ;;  %788 = vmatmul.mubr.f32.gmra.mrb[2].mxu0 %v129_v14 }
  0x18   :  { %767 = vmatpush3.msra.mxu1 %v141_v12  ;;  %763 = vmatprep.mubr.f32.mxu1 %v119_v13 }
  0x19   :  { %792 = vmatprep.mubr.f32.mxu0 %v99_v8 }
  0x1b   :  { %764 = vmatmul.mubr.f32.gmra.mrb[2].mxu1 %v129_v14  ;;  %793 = vmatmul.mubr.f32.vlgmr.msra.gmra.mrb[0].mxu0 %v109_v9 }
  0x1c   :  { %768 = vmatprep.mubr.f32.mxu1 %v100_v15  ;;  %795 = vmatprep.mubr.f32.mxu0 %v119_v13 }
  0x1f   :  { %769 = vmatmul.mubr.f32.vlgmr.msra.gmra.mrb[0].mxu1 %v110_v16  ;;  %796 = vmatmul.mubr.f32.gmra.mrb[2].mxu0 %v129_v14 }
  0x20   :  { %771 = vmatprep.mubr.f32.mxu1 %v120_v18 }
  0x23   :  { %772 = vmatmul.mubr.f32.gmra.mrb[2].mxu1 %v130_v19 }
  0xee   :  { %v794_v34 = vpop.f32.mrb[0].mxu0 }
  0xef   :  { %v586_v35 = vpop.f32.mrb[1].mxu0 }
  0xf2   :  { %v770_v36 = vpop.f32.mrb[0].mxu1  ;;  %v797_v37 = vpop.f32.mrb[2].mxu0 }
  0xf3   :  { %v798_v38 = vadd.f32 %v794_v34, %v770_v36  ;;  %v303_v39 = vpop.f32.mrb[1].mxu1  ;;  %v598_v40 = vpop.f32.mrb[3].mxu0 }
  0xf4   :  { %v799_v41 = vadd.f32 %v586_v35, %v303_v39 }
  0xf5   :  { %v609_v42 = vmul.f32 %v798_v38, %v798_v38 }
  0xf6   :  { %v608_v43 = vmul.f32 %v799_v41, %v799_v41  ;;  %v773_v44 = vpop.f32.mrb[2].mxu1 }
  0xf7   :  { %v800_v45 = vadd.f32 %v797_v37, %v773_v44  ;;  %v317_v46 = vpop.f32.mrb[3].mxu1 }
  0xf8   :  { %v610_v47 = vadd.f32 %v609_v42, %v608_v43  ;;  %v801_v48 = vadd.f32 %v598_v40, %v317_v46  ;;  %v856_v43 = vmov 1.0  }
  0xf9   :  { %v613_v50 = vmul.f32 %v800_v45, %v800_v45 }
  0xfa   :  { %v611_v49 = vmul.f32 %v801_v48, %v801_v48 }
  0xfc   :  { %v612_v51 = vadd.f32 %v611_v49, %v610_v47 }
  0xfe   :  { %v614_v52 = vadd.f32 %v613_v50, %v612_v51 }
 0x100   :  { %820 = vrsqrt.f32 %v614_v52  ;;  %vm617_vm1 = vcmp.eq.f32.partialorder %v614_v52, inf  ;;  %v620_v55 = vand.u32 2147483648, %v614_v52  ;;  %vm619_vm2 = vcmp.eq.f32.partialorder %v614_v52, 0.0 }
 0x10a   :  { %v821_v53 = vpop.eup %820 }
 0x10b   :  { %v616_v54 = vmul.f32 %v821_v53, %v614_v52 }
 0x10d   :  { %v618_v58 = vsel %vm617_vm1, %v614_v52, %v616_v54 }
 0x10e   :  { %v621_v59 = vsel %vm619_vm2, %v620_v55, %v618_v58 }
 0x10f   :  { %v623_v60 = vadd.f32 %v622_v56, %v621_v59  ;;  %v626_v61 = vadd.f32 %v719_v57, %v621_v59 }
 0x111   :  { %v627_v62 = vmul.f32 0.70710677, %v623_v60  ;;  %v655_v63 = vmul.f32 0.70710677, %v626_v61 }
 0x113   :  { %v630_v0 = vand.u32 2147483647, %v627_v62  ;;  %v658_v1 = vand.u32 2147483647, %v655_v63  ;;  %vm628_vm3 = vcmp.lt.f32.partialorder %v627_v62, 0.0  ;;  %vm656_vm4 = vcmp.lt.f32.partialorder %v655_v63, 0.0 }
 0x114   :  { %v629_v44 = vsel %vm628_vm3, -1.0, %v856_v43  ;;  %v657_v47 = vsel %vm656_vm4, -1.0, %v856_v43 }
 0x115   :  { %v631_v2 = vmul.f32 0.3275911, %v630_v0  ;;  %v659_v3 = vmul.f32 0.3275911, %v658_v1  ;;  %v646_v9 = vsub.f32 0.0, %v630_v0  ;;  %v674_v12 = vsub.f32 0.0, %v658_v1 }
 0x117   :  { %v632_v4 = vadd.f32 1.0, %v631_v2  ;;  %v660_v5 = vadd.f32 1.0, %v659_v3  ;;  %v647_v15 = vmul.f32 %v646_v9, %v630_v0  ;;  %v675_v18 = vmul.f32 %v674_v12, %v658_v1 }
 0x119   :  { %822 = vrcp.f32 %v632_v4  ;;  %v648_v21 = vmul.f32 1.442695, %v647_v15  ;;  %v676_v24 = vmul.f32 1.442695, %v675_v18 }
 0x11a   :  { %824 = vrcp.f32 %v660_v5 }
 0x11b   :  { %826 = vpow2.f32 %v648_v21 }
 0x11c   :  { %828 = vpow2.f32 %v676_v24 }
 0x123   :  { %v823_v6 = vpop.eup %822 }
 0x124   :  { %v825_v7 = vpop.eup %824  ;;  %v634_v8 = vmul.f32 %v823_v6, %v632_v4 }
 0x125   :  { %v662_v10 = vmul.f32 %v825_v7, %v660_v5  ;;  %v827_v37 = vpop.eup %826 }
 0x126   :  { %v635_v11 = vsub.f32 2.0, %v634_v8  ;;  %v829_v39 = vpop.eup %828 }
 0x127   :  { %v663_v13 = vsub.f32 2.0, %v662_v10 }
 0x128   :  { %v636_v14 = vmul.f32 %v823_v6, %v635_v11 }
 0x129   :  { %v664_v16 = vmul.f32 %v825_v7, %v663_v13 }
 0x12a   :  { %v637_v17 = vmul.f32 1.0614054, %v636_v14 }
 0x12b   :  { %v665_v19 = vmul.f32 1.0614054, %v664_v16 }
 0x12c   :  { %v638_v20 = vadd.f32 -1.4531521, %v637_v17 }
 0x12d   :  { %v666_v22 = vadd.f32 -1.4531521, %v665_v19 }
 0x12e   :  { %v639_v23 = vmul.f32 %v638_v20, %v636_v14 }
 0x12f   :  { %v667_v25 = vmul.f32 %v666_v22, %v664_v16 }
 0x130   :  { %v640_v26 = vadd.f32 1.4214138, %v639_v23 }
 0x131   :  { %v668_v27 = vadd.f32 1.4214138, %v667_v25 }
 0x132   :  { %v641_v28 = vmul.f32 %v640_v26, %v636_v14 }
 0x133   :  { %v669_v29 = vmul.f32 %v668_v27, %v664_v16 }
 0x134   :  { %v642_v30 = vadd.f32 -0.28449672, %v641_v28 }
 0x135   :  { %v670_v31 = vadd.f32 -0.28449672, %v669_v29 }
 0x136   :  { %v643_v32 = vmul.f32 %v642_v30, %v636_v14 }
 0x137   :  { %v671_v33 = vmul.f32 %v670_v31, %v664_v16 }
 0x138   :  { %v644_v34 = vadd.f32 0.2548296, %v643_v32 }
 0x139   :  { %v672_v35 = vadd.f32 0.2548296, %v671_v33 }
 0x13a   :  { %v645_v36 = vmul.f32 %v644_v34, %v636_v14 }
 0x13b   :  { %v673_v38 = vmul.f32 %v672_v35, %v664_v16 }
 0x13c   :  { %v650_v40 = vmul.f32 %v827_v37, %v645_v36 }
 0x13d   :  { %v678_v41 = vmul.f32 %v829_v39, %v673_v38 }
 0x13e   :  { %v651_v42 = vsub.f32 1.0, %v650_v40 }
 0x13f   :  { %v679_v45 = vsub.f32 1.0, %v678_v41 }
 0x140   :  { %v652_v46 = vmul.f32 %v651_v42, %v629_v44 }
 0x141   :  { %v680_v48 = vmul.f32 %v679_v45, %v657_v47 }
 0x142   :  { %v653_v49 = vadd.f32 1.0, %v652_v46 }
 0x143   :  { %v681_v50 = vadd.f32 1.0, %v680_v48 }
 0x144   :  { %v654_v51 = vmul.f32 0.5, %v653_v49 }
 0x145   :  { %v682_v52 = vmul.f32 0.5, %v681_v50 }
 0x147   :  { %v683_v53 = vsub.f32 %v654_v51, %v682_v52 }
 0x149   :  { %v684_v54 = vmax.f32 %v683_v53, 1e-30 }
 0x14b   :  { %830 = vlog2.f32 %v684_v54 }
 0x155   :  { %v831_v55 = vpop.eup %830 }
 0x156   :  { %v686_v56 = vmul.f32 0.6931472, %v831_v55 }
 0x158   :  { %v687_v57 = vrot.slane %v686_v56, 4 }
 0x15a   :  { %v688_v58 = vadd.f32 %v687_v57, %v686_v56 }
 0x15c   :  { %v689_v59 = vrot.slane %v688_v58, 2 }
 0x15e   :  { %v690_v60 = vadd.f32 %v689_v59, %v688_v58 }
 0x160   :  { %v691_v61 = vrot.slane %v690_v60, 1 }
 0x162   :  { %v692_v62 = vadd.f32 %v691_v61, %v690_v60 }
 0x164   :  { %697 = vst [vmem:[#allocation2] sm:$0x1] %v692_v62 }
 0x165   :  { %843 = shalt.err (!%p840_p4)
}
 0x166   :  { %s844_s29 = scalar_lea.hbm %s914_s3, 16 }
 0x167   :  { %p845_p5 = scmp.ne.s32.totalorder %s914_s3, %s844_s29  ;;  %p848_p6 = scmp.lt.u32.totalorder %s844_s29, %s914_s3 }
 0x169   :  { %p850_p7 = pnand %p848_p6, %p845_p5 }
 0x16b   :  { %853 = shalt.err (!%p850_p7)
}
 0x16c   :  { %714 = dma.vmem_to_hbm [thread:$0]  %s712_s24, 16, %s914_s3, [#allocation3]  }
 0x16d   :  { %854 = dma.done.wait [#allocation3], 16  }
 0x16e   :  { %855 = vsyncadd [#allocation3], 4294967280 }
 0x16f   :  { %718 = vsyncpa [#allocation3], 1 }

</bundles_post_ra>
